<compile_context>
chip_gen: v7x
topology: tpu7x:2x2x1
jax: 0.10.0
libtpu: 0.0.40
codegen_flags: <defaults>
</compile_context>

<pallas_src>
import functools

import jax
import jax.numpy as jnp
from jax.experimental import pallas as pl
from jax.experimental.pallas import tpu as pltpu

BN_EPS = 1e-5
LANE = 128
SUBLANE_BF16 = 16


def _round_up(n, m):
    return ((n + m - 1) // m) * m


def _pick_tile(dim_padded, preferred):
    """Largest multiple of LANE that divides dim_padded and is <= preferred."""
    best = LANE
    t = LANE
    while t <= min(preferred, dim_padded):
        if dim_padded % t == 0:
            best = t
        t += LANE
    return best


def mlp_kernel(x_ref, w1_ref, gamma_ref, beta_ref, a_ref, w2_ref, b2_ref,
               o_ref, *, inv_batch):
    """One grid step = one tile of the hidden dim (the W2 contraction axis)."""
    k = pl.program_id(0)

    # ---- Linear(inp -> hidden tile): bf16 MXU inputs, f32 accumulation. ----
    # b1 is intentionally NOT added: train-mode BN subtracts the batch mean
    # immediately after, so a per-feature bias cancels exactly.
    h = jnp.dot(x_ref[...], w1_ref[...],
                preferred_element_type=jnp.float32)            # [B_pad, tk] f32

    # ---- BatchNorm1d (training mode, biased batch statistics). -------------
    # Padded batch rows of x are all-zero -> contribute 0 to both sums;
    # dividing by the logical batch size gives exact statistics.
    mean = jnp.sum(h, axis=0, keepdims=True) * inv_batch        # [1, tk]
    ex2 = jnp.sum(h * h, axis=0, keepdims=True) * inv_batch     # [1, tk]
    var = ex2 - mean * mean                                     # biased var
    h = (h - mean) * jax.lax.rsqrt(var + BN_EPS)
    h = h * gamma_ref[...] + beta_ref[...]

    # ---- PReLU (single shared parameter, read from the SMEM scalar path). --
    a = a_ref[0, 0]
    h = jnp.where(h > 0, h, a * h)

    # ---- Linear(hidden tile -> out): accumulate into the resident output. --
    contrib = jnp.dot(h.astype(jnp.bfloat16), w2_ref[...],
                      preferred_element_type=jnp.float32)       # [B_pad, out_p]

    @pl.when(k == 0)
    def _init():
        o_ref[...] = contrib

    @pl.when(k > 0)
    def _accumulate():
        o_ref[...] += contrib

    @pl.when(k == pl.num_programs(0) - 1)
    def _finalize():
        o_ref[...] += b2_ref[...]


def init_params(key, inp_size, outp_size, hidden_size):
    """Deterministic synthetic init mirroring the PyTorch module's defaults."""
    k1, k2, k3, k4 = jax.random.split(key, 4)
    bound1 = 1.0 / jnp.sqrt(inp_size)
    bound2 = 1.0 / jnp.sqrt(hidden_size)
    # Linear weights stored as [in, out] (transposed vs PyTorch's [out, in]).
    return {
        "w1": jax.random.uniform(k1, (inp_size, hidden_size), jnp.float32,
                                 -bound1, bound1),
        # Kept for parity with nn.Linear / a future eval-mode BN path; it is a
        # mathematical no-op under train-mode BN and is not streamed in-kernel.
        "b1": jax.random.uniform(k2, (1, hidden_size), jnp.float32,
                                 -bound1, bound1),
        "gamma": jnp.ones((1, hidden_size), jnp.float32),    # BatchNorm weight
        "beta": jnp.zeros((1, hidden_size), jnp.float32),    # BatchNorm bias
        "prelu_a": jnp.full((1, 1), 0.25, jnp.float32),      # PReLU default
        "w2": jax.random.uniform(k3, (hidden_size, outp_size), jnp.float32,
                                 -bound2, bound2),
        "b2": jax.random.uniform(k4, (1, outp_size), jnp.float32,
                                 -bound2, bound2),
    }


def pack_params(params):
    """One-time pack: pad feature dims to 128-multiples, weights -> bf16."""
    inp, hid = params["w1"].shape
    out = params["w2"].shape[1]
    inp_p, hid_p, out_p = (_round_up(d, LANE) for d in (inp, hid, out))

    def pad2(a, rows, cols):
        return jnp.pad(a, ((0, rows - a.shape[0]), (0, cols - a.shape[1])))

    packed = {
        "w1": pad2(params["w1"], inp_p, hid_p).astype(jnp.bfloat16),
        "gamma": pad2(params["gamma"], 1, hid_p),            # f32 (pad = 0)
        "beta": pad2(params["beta"], 1, hid_p),              # f32 (pad = 0)
        "prelu_a": params["prelu_a"],                        # (1,1) f32 -> SMEM
        "w2": pad2(params["w2"], hid_p, out_p).astype(jnp.bfloat16),
        "b2": pad2(params["b2"], 1, out_p),                  # f32
    }
    return packed, (inp, hid, out), (inp_p, hid_p, out_p)


def mlp_forward(x, packed, logical_dims, padded_dims, *, tile_k=256):
    """x: [B, inp] f32.  Returns [B, out] f32 (train-mode BN forward)."""
    inp, hid, out = logical_dims
    inp_p, hid_p, out_p = padded_dims
    B = x.shape[0]

    # MXU-friendly batch: >=128 rows, multiple of 16 for the bf16 x block.
    # Zero rows are BN-safe because the stats divide by the logical batch.
    b_pad = _round_up(max(B, LANE), SUBLANE_BF16)

    # Hidden-tile size: largest 128-multiple that exactly divides hid_p.
    tk = _pick_tile(hid_p, tile_k)
    grid = (hid_p // tk,)

    x_p = jnp.pad(x, ((0, b_pad - B), (0, inp_p - inp))).astype(jnp.bfloat16)

    # Accurate cost estimate (layer-1 runs once; W1 streamed once).
    flops = 2 * b_pad * inp_p * hid_p + 2 * b_pad * hid_p * out_p
    bytes_accessed = (x_p.size * 2 + packed["w1"].size * 2
                      + packed["w2"].size * 2
                      + 4 * (packed["gamma"].size + packed["beta"].size
                             + packed["b2"].size)
                      + 4 * b_pad * out_p)

    # VMEM budget from actual block sums (streamed blocks double-buffered by
    # the runtime); clamped at 40 MiB to stay inside v7x's 64 MiB/TC VMEM.
    vmem_need = (2 * b_pad * inp_p * 2          # x block (constant index)
                 + 2 * inp_p * tk * 2           # w1 tile (bf16, 2 buffers)
                 + 2 * 2 * tk * 4               # gamma + beta tiles
                 + 2 * tk * out_p * 2           # w2 tile (bf16, 2 buffers)
                 + 2 * out_p * 4                # b2
                 + 2 * b_pad * out_p * 4)       # resident f32 output block
    vmem_limit = int(min(max(vmem_need + (4 << 20), 8 << 20), 40 << 20))

    kernel = functools.partial(mlp_kernel, inv_batch=1.0 / B)

    out_padded = pl.pallas_call(
        kernel,
        out_shape=jax.ShapeDtypeStruct((b_pad, out_p), jnp.float32),
        grid=grid,
        in_specs=[
            pl.BlockSpec((b_pad, inp_p), lambda k: (0, 0)),     # x (resident)
            pl.BlockSpec((inp_p, tk), lambda k: (0, k)),        # w1 tile
            pl.BlockSpec((1, tk), lambda k: (0, k)),            # gamma
            pl.BlockSpec((1, tk), lambda k: (0, k)),            # beta
            pl.BlockSpec(memory_space=pltpu.MemorySpace.SMEM),  # prelu_a
            pl.BlockSpec((tk, out_p), lambda k: (k, 0)),        # w2 tile
            pl.BlockSpec((1, out_p), lambda k: (0, 0)),         # b2
        ],
        out_specs=pl.BlockSpec((b_pad, out_p), lambda k: (0, 0)),
        compiler_params=pltpu.CompilerParams(
            dimension_semantics=("arbitrary",),   # reduction axis
            vmem_limit_bytes=vmem_limit,
        ),
        cost_estimate=pl.CostEstimate(
            flops=flops, transcendentals=hid_p,
            bytes_accessed=bytes_accessed),
    )(
        x_p,
        packed["w1"], packed["gamma"], packed["beta"], packed["prelu_a"],
        packed["w2"], packed["b2"],
    )
    return out_padded[:B, :out]


def mlp_reference(x, params):
    """Pure-JAX reference of the PyTorch forward (train-mode BN), mirroring the
    kernel's bf16 casts on the matmul operands so the comparison is tight.
    b1 IS included here: train-mode BN cancels it, which the kernel exploits."""
    w1 = params["w1"].astype(jnp.bfloat16).astype(jnp.float32)
    w2 = params["w2"].astype(jnp.bfloat16).astype(jnp.float32)
    xb = x.astype(jnp.bfloat16).astype(jnp.float32)
    h = xb @ w1 + params["b1"]
    mean = jnp.mean(h, axis=0, keepdims=True)
    var = jnp.mean((h - mean) ** 2, axis=0, keepdims=True)
    h = (h - mean) * jax.lax.rsqrt(var + BN_EPS)
    h = h * params["gamma"] + params["beta"]
    a = params["prelu_a"][0, 0]
    h = jnp.where(h > 0, h, a * h)
    hb = h.astype(jnp.bfloat16).astype(jnp.float32)
    return hb @ w2 + params["b2"]


if __name__ == "__main__":
    # Small shapes consistent with the module: batch=8, inp=16, hidden=32, outp=16.
    B, INP, HID, OUT = 8, 16, 32, 16

    key = jax.random.PRNGKey(0)
    kx, kp = jax.random.split(key)
    x = jax.random.normal(kx, (B, INP), jnp.float32)
    params = init_params(kp, INP, OUT, HID)
    packed, logical, padded = pack_params(params)

    y = mlp_forward(x, packed, logical, padded)
    y = jax.block_until_ready(y)

    y_ref = mlp_reference(x, params)
    assert y.shape == (B, OUT)
    assert jnp.allclose(y, y_ref, atol=3e-3, rtol=3e-3), "mismatch vs reference"

    # TODO(synk): PyTorch BatchNorm1d in .train() also updates running_mean /
    # running_var buffers as a side effect; this forward-only kernel does not.

    print("KERNEL_OK")
</pallas_src>

<mosaic_0001>
module attributes {stable_mosaic.version = 11 : i64} {
  func.func @mlp_kernel(%arg0: i32, %arg1: memref<128x128xbf16, #tpu.memory_space<vmem>>, %arg2: memref<128x128xbf16, #tpu.memory_space<vmem>>, %arg3: memref<1x128xf32, #tpu.memory_space<vmem>>, %arg4: memref<1x128xf32, #tpu.memory_space<vmem>>, %arg5: memref<1x1xf32, #tpu.memory_space<smem>>, %arg6: memref<128x128xbf16, #tpu.memory_space<vmem>>, %arg7: memref<1x128xf32, #tpu.memory_space<vmem>>, %arg8: memref<128x128xf32, #tpu.memory_space<vmem>>) attributes {dimension_semantics = [#tpu.dimension_semantics<arbitrary>], iteration_bounds = array<i64: 1>, scalar_prefetch = 0 : i64, scratch_operands = 0 : i64, tpu.core_type = #tpu.core_type<tc>, window_params = [{pipeline_mode = #tpu.pipeline_mode<synchronous>, transform_indices = @transform_0, window_bounds = array<i64: 128, 128>}, {transform_indices = @transform_1, window_bounds = array<i64: 128, 128>}, {transform_indices = @transform_2, window_bounds = array<i64: 1, 128>}, {transform_indices = @transform_3, window_bounds = array<i64: 1, 128>}, {transform_indices = @transform_4, window_bounds = array<i64: 1, 1>}, {transform_indices = @transform_5, window_bounds = array<i64: 128, 128>}, {pipeline_mode = #tpu.pipeline_mode<synchronous>, transform_indices = @transform_6, window_bounds = array<i64: 1, 128>}, {pipeline_mode = #tpu.pipeline_mode<synchronous>, transform_indices = @transform_7, window_bounds = array<i64: 128, 128>}]} {
    %c0 = arith.constant 0 : index
    %c0_0 = arith.constant 0 : index
    %0 = vector.load %arg1[%c0, %c0_0] : memref<128x128xbf16, #tpu.memory_space<vmem>>, vector<128x128xbf16>
    %c0_1 = arith.constant 0 : index
    %c0_2 = arith.constant 0 : index
    %1 = vector.load %arg2[%c0_1, %c0_2] : memref<128x128xbf16, #tpu.memory_space<vmem>>, vector<128x128xbf16>
    %cst = arith.constant dense<0.000000e+00> : vector<128x128xf32>
    %2 = tpu.matmul %0, %1, %cst {dimension_numbers = #tpu.dot_dimension_numbers<[1], [0], [0], [1], [0, 0, 1, 1], [], []>} : vector<128x128xbf16>, vector<128x128xbf16>, vector<128x128xf32> -> vector<128x128xf32>
    %cst_3 = arith.constant dense<0.000000e+00> : vector<128xf32>
    %3 = vector.multi_reduction <add>, %2, %cst_3 [0] : vector<128x128xf32> to vector<128xf32>
    %4 = vector.shape_cast %3 : vector<128xf32> to vector<1x128xf32>
    %cst_4 = arith.constant 1.250000e-01 : f32
    %5 = vector.broadcast %cst_4 : f32 to vector<1x128xf32>
    %6 = arith.mulf %4, %5 : vector<1x128xf32>
    %7 = arith.mulf %2, %2 : vector<128x128xf32>
    %cst_5 = arith.constant dense<0.000000e+00> : vector<128xf32>
    %8 = vector.multi_reduction <add>, %7, %cst_5 [0] : vector<128x128xf32> to vector<128xf32>
    %9 = vector.shape_cast %8 : vector<128xf32> to vector<1x128xf32>
    %cst_6 = arith.constant 1.250000e-01 : f32
    %10 = vector.broadcast %cst_6 : f32 to vector<1x128xf32>
    %11 = arith.mulf %9, %10 : vector<1x128xf32>
    %12 = arith.mulf %6, %6 : vector<1x128xf32>
    %13 = arith.subf %11, %12 : vector<1x128xf32>
    %14 = vector.broadcast %6 : vector<1x128xf32> to vector<128x128xf32>
    %15 = arith.subf %2, %14 : vector<128x128xf32>
    %cst_7 = arith.constant 9.99999974E-6 : f32
    %16 = vector.broadcast %cst_7 : f32 to vector<1x128xf32>
    %17 = arith.addf %13, %16 : vector<1x128xf32>
    %18 = math.rsqrt %17 : vector<1x128xf32>
    %19 = vector.broadcast %18 : vector<1x128xf32> to vector<128x128xf32>
    %20 = arith.mulf %15, %19 : vector<128x128xf32>
    %c0_8 = arith.constant 0 : index
    %c0_9 = arith.constant 0 : index
    %21 = vector.load %arg3[%c0_8, %c0_9] : memref<1x128xf32, #tpu.memory_space<vmem>>, vector<1x128xf32>
    %22 = vector.broadcast %21 : vector<1x128xf32> to vector<128x128xf32>
    %23 = arith.mulf %20, %22 : vector<128x128xf32>
    %c0_10 = arith.constant 0 : index
    %c0_11 = arith.constant 0 : index
    %24 = vector.load %arg4[%c0_10, %c0_11] : memref<1x128xf32, #tpu.memory_space<vmem>>, vector<1x128xf32>
    %25 = vector.broadcast %24 : vector<1x128xf32> to vector<128x128xf32>
    %26 = arith.addf %23, %25 : vector<128x128xf32>
    %c0_12 = arith.constant 0 : index
    %c0_13 = arith.constant 0 : index
    %27 = memref.load %arg5[%c0_12, %c0_13] : memref<1x1xf32, #tpu.memory_space<smem>>
    %cst_14 = arith.constant 0.000000e+00 : f32
    %28 = vector.broadcast %cst_14 : f32 to vector<128x128xf32>
    %29 = arith.cmpf ogt, %26, %28 : vector<128x128xf32>
    %30 = vector.broadcast %27 : f32 to vector<128x128xf32>
    %31 = arith.mulf %30, %26 : vector<128x128xf32>
    %32 = arith.select %29, %26, %31 : vector<128x128xi1>, vector<128x128xf32>
    %33 = arith.truncf %32 : vector<128x128xf32> to vector<128x128xbf16>
    %c0_15 = arith.constant 0 : index
    %c0_16 = arith.constant 0 : index
    %34 = vector.load %arg6[%c0_15, %c0_16] : memref<128x128xbf16, #tpu.memory_space<vmem>>, vector<128x128xbf16>
    %cst_17 = arith.constant dense<0.000000e+00> : vector<128x128xf32>
    %35 = tpu.matmul %33, %34, %cst_17 {dimension_numbers = #tpu.dot_dimension_numbers<[1], [0], [0], [1], [0, 0, 1, 1], [], []>} : vector<128x128xbf16>, vector<128x128xbf16>, vector<128x128xf32> -> vector<128x128xf32>
    %c0_i32 = arith.constant 0 : i32
    %36 = arith.cmpi eq, %arg0, %c0_i32 : i32
    %37 = arith.extui %36 : i1 to i32
    %c0_i32_18 = arith.constant 0 : i32
    %38 = arith.cmpi ne, %37, %c0_i32_18 : i32
    scf.if %38 {
      %c0_23 = arith.constant 0 : index
      %c0_24 = arith.constant 0 : index
      %45 = vector.load %arg8[%c0_23, %c0_24] : memref<128x128xf32, #tpu.memory_space<vmem>>, vector<128x128xf32>
      tpu.vector_store %arg8[%c0_23, %c0_24], %35 {strides = array<i32>} : memref<128x128xf32, #tpu.memory_space<vmem>>, vector<128x128xf32>,
    } else {
    }
    %c0_i32_19 = arith.constant 0 : i32
    %39 = arith.cmpi sgt, %arg0, %c0_i32_19 : i32
    %40 = arith.extui %39 : i1 to i32
    %c0_i32_20 = arith.constant 0 : i32
    %41 = arith.cmpi ne, %40, %c0_i32_20 : i32
    scf.if %41 {
      %c0_23 = arith.constant 0 : index
      %c0_24 = arith.constant 0 : index
      %45 = vector.load %arg8[%c0_23, %c0_24] : memref<128x128xf32, #tpu.memory_space<vmem>>, vector<128x128xf32>
      %46 = arith.addf %45, %35 : vector<128x128xf32>
      %c0_25 = arith.constant 0 : index
      %c0_26 = arith.constant 0 : index
      %47 = vector.load %arg8[%c0_25, %c0_26] : memref<128x128xf32, #tpu.memory_space<vmem>>, vector<128x128xf32>
      tpu.vector_store %arg8[%c0_25, %c0_26], %46 {strides = array<i32>} : memref<128x128xf32, #tpu.memory_space<vmem>>, vector<128x128xf32>,
    } else {
    }
    %c0_i32_21 = arith.constant 0 : i32
    %42 = arith.cmpi eq, %arg0, %c0_i32_21 : i32
    %43 = arith.extui %42 : i1 to i32
    %c0_i32_22 = arith.constant 0 : i32
    %44 = arith.cmpi ne, %43, %c0_i32_22 : i32
    scf.if %44 {
      %c0_23 = arith.constant 0 : index
      %c0_24 = arith.constant 0 : index
      %45 = vector.load %arg8[%c0_23, %c0_24] : memref<128x128xf32, #tpu.memory_space<vmem>>, vector<128x128xf32>
      %c0_25 = arith.constant 0 : index
      %c0_26 = arith.constant 0 : index
      %46 = vector.load %arg7[%c0_25, %c0_26] : memref<1x128xf32, #tpu.memory_space<vmem>>, vector<1x128xf32>
      %47 = vector.broadcast %46 : vector<1x128xf32> to vector<128x128xf32>
      %48 = arith.addf %45, %47 : vector<128x128xf32>
      %c0_27 = arith.constant 0 : index
      %c0_28 = arith.constant 0 : index
      %49 = vector.load %arg8[%c0_27, %c0_28] : memref<128x128xf32, #tpu.memory_space<vmem>>, vector<128x128xf32>
      tpu.vector_store %arg8[%c0_27, %c0_28], %48 {strides = array<i32>} : memref<128x128xf32, #tpu.memory_space<vmem>>, vector<128x128xf32>,
    } else {
    }
    return
  }
  func.func @transform_0(%arg0: i32) -> (i32, i32) {
    %c0_i32 = arith.constant 0 : i32
    %c0_i32_0 = arith.constant 0 : i32
    %c0_i32_1 = arith.constant 0 : i32
    return %c0_i32, %c0_i32_0 : i32, i32
  }
  func.func @transform_1(%arg0: i32) -> (i32, i32) {
    %c0_i32 = arith.constant 0 : i32
    %c0_i32_0 = arith.constant 0 : i32
    return %c0_i32, %arg0 : i32, i32
  }
  func.func @transform_2(%arg0: i32) -> (i32, i32) {
    %c0_i32 = arith.constant 0 : i32
    %c0_i32_0 = arith.constant 0 : i32
    return %c0_i32, %arg0 : i32, i32
  }
  func.func @transform_3(%arg0: i32) -> (i32, i32) {
    %c0_i32 = arith.constant 0 : i32
    %c0_i32_0 = arith.constant 0 : i32
    return %c0_i32, %arg0 : i32, i32
  }
  func.func @transform_4(%arg0: i32) -> (i32, i32) {
    %c0_i32 = arith.constant 0 : i32
    %c0_i32_0 = arith.constant 0 : i32
    %c0_i32_1 = arith.constant 0 : i32
    return %c0_i32, %c0_i32_0 : i32, i32
  }
  func.func @transform_5(%arg0: i32) -> (i32, i32) {
    %c0_i32 = arith.constant 0 : i32
    %c0_i32_0 = arith.constant 0 : i32
    return %arg0, %c0_i32 : i32, i32
  }
  func.func @transform_6(%arg0: i32) -> (i32, i32) {
    %c0_i32 = arith.constant 0 : i32
    %c0_i32_0 = arith.constant 0 : i32
    %c0_i32_1 = arith.constant 0 : i32
    return %c0_i32, %c0_i32_0 : i32, i32
  }
  func.func @transform_7(%arg0: i32) -> (i32, i32) {
    %c0_i32 = arith.constant 0 : i32
    %c0_i32_0 = arith.constant 0 : i32
    %c0_i32_1 = arith.constant 0 : i32
    return %c0_i32, %c0_i32_0 : i32, i32
  }
}

</mosaic_0001>

<bundles_post_ra>
// kernel: tpu_custom_call.1
= control target key start
LH: loop header
LB: loop body
LE: loop exit
PB: predicated region body
PF: predicated region fallthrough
CT: control target
= control target key end

     0   :  { %13 = vsyncpa [#allocation4], 0  ;;  %s1378_s0 = inlined_call_operand.hbm [shape: bf16[128,128], index: 0, kind: input, shape index: {}]   ;;  %s1379_s1 = inlined_call_operand.hbm [shape: bf16[128,128], index: 1, kind: input, shape index: {}]   ;;  %s1380_s2 = inlined_call_operand.vmem [shape: f32[1,128], index: 2, kind: input, shape index: {}]   ;;  %s1381_s3 = inlined_call_operand.vmem [shape: f32[1,128], index: 3, kind: input, shape index: {}]   ;;  %s1382_s4 = inlined_call_operand.<no memory space> [shape: f32[1,1], index: 4, kind: input, shape index: {}]   ;;  %s1383_s5 = inlined_call_operand.hbm [shape: bf16[128,128], index: 5, kind: input, shape index: {}]   ;;  %s1384_s6 = inlined_call_operand.vmem [shape: f32[1,128], index: 6, kind: input, shape index: {}]   ;;  %s1385_s7 = inlined_call_operand.hbm [shape: f32[128,128], index: 7, kind: output, shape index: {}]  }
   0x1   :  { %14 = vsyncpa [#allocation7], 0 }
   0x2   :  { %15 = vsyncpa [#allocation5], 0  ;;  %s1055_s24 = smov [#allocation6]   ;;  %s1056_s26 = smov [#allocation3]  }
   0x3   :  { %s33_s25 = sshll.u32 %s1055_s24, 4  ;;  %s21_s27 = sshll.u32 %s1056_s26, 4  ;;  %s34_s25 = int_to_ptr.vmem [resolvable:$true] %s33_s25  ;;  %s1103_s27 = int_to_ptr.vmem [resolvable:$true] %s21_s27 }
   0x4   :  { %s961_s30 = scalar_lea.hbm %s1379_s1, 1024 }
   0x5   :  { %p962_p0 = scmp.ne.s32.totalorder %s1379_s1, %s961_s30  ;;  %p965_p1 = scmp.lt.u32.totalorder %s961_s30, %s1379_s1 }
   0x7   :  { %p967_p2 = pnand %p965_p1, %p962_p0 }
   0x9   :  { %970 = shalt.err (!%p967_p2)
}
   0xa   :  { %s971_s12 = scalar_lea.vmem %s34_s25, 1024  ;;  %p976_p4 = scmp.lt.s32.totalorder %s34_s25, %s34_s25 }
   0xb   :  { %p972_p3 = scmp.ne.s32.totalorder %s34_s25, %s971_s12  ;;  %p977_p5 = scmp.lt.s32.totalorder %s971_s12, %s971_s12 }
   0xd   :  { %p978_p6 = por %p977_p5, %p976_p4 }
   0xf   :  { %p979_p7 = pnand %p978_p6, %p972_p3 }
  0x11   :  { %982 = shalt.err (!%p979_p7)
}
  0x12   :  { %s1057_s13 = smov 64   ;;  %s1058_s14 = smov 4  }
  0x13   :  { %39 = dma.hbm_to_vmem [thread:$0]  %s1379_s1, 1024, %s34_s25, [#allocation7], %s1057_s13, %s1057_s13, %s1058_s14  }
  0x14   :  { %s983_s19 = scalar_lea.hbm %s1378_s0, 1024 }
  0x15   :  { %p984_p8 = scmp.ne.s32.totalorder %s1378_s0, %s983_s19  ;;  %p987_p9 = scmp.lt.u32.totalorder %s983_s19, %s1378_s0 }
  0x17   :  { %p989_p10 = pnand %p987_p9, %p984_p8 }
  0x19   :  { %992 = shalt.err (!%p989_p10)
}
  0x1a   :  { %s993_s24 = scalar_lea.vmem %s1103_s27, 1024  ;;  %p998_p12 = scmp.lt.s32.totalorder %s1103_s27, %s1103_s27 }
  0x1b   :  { %p994_p11 = scmp.ne.s32.totalorder %s1103_s27, %s993_s24  ;;  %p999_p13 = scmp.lt.s32.totalorder %s993_s24, %s993_s24 }
  0x1d   :  { %p1000_p0 = por %p999_p13, %p998_p12 }
  0x1f   :  { %p1001_p1 = pnand %p1000_p0, %p994_p11 }
  0x21   :  { %1004 = shalt.err (!%p1001_p1)
}
  0x22   :  { %27 = dma.hbm_to_vmem [thread:$0]  %s1378_s0, 1024, %s1103_s27, [#allocation4], %s1057_s13, %s1057_s13, %s1058_s14  }
  0x23   :  { %s1059_s26 = smov [#allocation8]   ;;  %s1005_s8 = scalar_lea.hbm %s1383_s5, 1024 }
  0x24   :  { %s51_s28 = sshll.u32 %s1059_s26, 4  ;;  %p1006_p2 = scmp.ne.s32.totalorder %s1383_s5, %s1005_s8  ;;  %s52_s28 = int_to_ptr.vmem [resolvable:$true] %s51_s28 }
  0x25   :  { %p1009_p3 = scmp.lt.u32.totalorder %s1005_s8, %s1383_s5 }
  0x27   :  { %p1011_p4 = pnand %p1009_p3, %p1006_p2 }
  0x29   :  { %1014 = shalt.err (!%p1011_p4)
}
  0x2a   :  { %s1015_s15 = scalar_lea.vmem %s52_s28, 1024  ;;  %p1020_p6 = scmp.lt.s32.totalorder %s52_s28, %s52_s28 }
  0x2b   :  { %p1016_p5 = scmp.ne.s32.totalorder %s52_s28, %s1015_s15  ;;  %p1021_p7 = scmp.lt.s32.totalorder %s1015_s15, %s1015_s15 }
  0x2d   :  { %p1022_p8 = por %p1021_p7, %p1020_p6 }
  0x2f   :  { %p1023_p9 = pnand %p1022_p8, %p1016_p5 }
  0x31   :  { %1026 = shalt.err (!%p1023_p9)
}
  0x32   :  { %57 = dma.hbm_to_vmem [thread:$0]  %s1383_s5, 1024, %s52_s28, [#allocation7], %s1057_s13, %s1057_s13, %s1058_s14  }
  0x33   :  { %1049 = dma.done.wait [#allocation4], 1024  }
  0x34   :  { %1050 = vsyncadd [#allocation4], 4294966272 }
  0x35   :  { %1051 = dma.done.wait [#allocation7], 2048  }
  0x36   :  { %1052 = vsyncadd [#allocation7], 4294965248  ;;  %v935_v0 = vld [vmem:[#allocation6] sm:$0xff]   ;;  %v936_v1 = vld [vmem:[#allocation6 + $0x8] sm:$0xff]  }
  0x37   :  { %863 = vmatprep.subr.bf16.mxu0 %v935_v0  ;;  %v937_v2 = vld [vmem:[#allocation6 + $0x10] sm:$0xff]   ;;  %v938_v3 = vld [vmem:[#allocation6 + $0x18] sm:$0xff]   ;;  %v943_v4 = vld [vmem:[#allocation3] sm:$0xff]  }
  0x38   :  { %864 = vmatpush3.bf16.msra.mxu0 %v935_v0  ;;  %879 = vmatprep.mubr.bf16.mxu0 %v943_v4  ;;  %v939_v5 = vld [vmem:[#allocation6 + $0x20] sm:$0xff]   ;;  %v940_v6 = vld [vmem:[#allocation6 + $0x28] sm:$0xff]   ;;  %v941_v7 = vld [vmem:[#allocation6 + $0x30] sm:$0xff]  }
  0x39   :  { %865 = vmatprep.subr.bf16.mxu0 %v936_v1  ;;  %v942_v8 = vld [vmem:[#allocation6 + $0x38] sm:$0xff]   ;;  %v944_v9 = vld [vmem:[#allocation3 + $0x8] sm:$0xff]   ;;  %v945_v10 = vld [vmem:[#allocation3 + $0x10] sm:$0xff]  }
  0x3a   :  { %v946_v11 = vld [vmem:[#allocation3 + $0x18] sm:$0xff]   ;;  %v947_v12 = vld [vmem:[#allocation3 + $0x20] sm:$0xff]   ;;  %v948_v13 = vld [vmem:[#allocation3 + $0x28] sm:$0xff]  }
  0x3b   :  { %v949_v14 = vld [vmem:[#allocation3 + $0x30] sm:$0xff]   ;;  %v950_v15 = vld [vmem:[#allocation3 + $0x38] sm:$0xff]   ;;  %v951_v16 = vld [vmem:[#allocation8] sm:$0xff]  }
  0x3c   :  { %866 = vmatpush3.bf16.msra.mxu0 %v936_v1  ;;  %895 = vmatprep.subr.bf16.mxu1 %v951_v16  ;;  %v952_v17 = vld [vmem:[#allocation8 + $0x8] sm:$0xff]   ;;  %v953_v18 = vld [vmem:[#allocation8 + $0x10] sm:$0xff]   ;;  %v954_v19 = vld [vmem:[#allocation8 + $0x18] sm:$0xff]  }
  0x3d   :  { %867 = vmatprep.subr.bf16.mxu0 %v937_v2  ;;  %896 = vmatpush3.bf16.msra.mxu1 %v951_v16  ;;  %v955_v20 = vld [vmem:[#allocation8 + $0x20] sm:$0xff]   ;;  %v956_v21 = vld [vmem:[#allocation8 + $0x28] sm:$0xff]   ;;  %v957_v22 = vld [vmem:[#allocation8 + $0x30] sm:$0xff]  }
  0x3e   :  { %897 = vmatprep.subr.bf16.mxu1 %v952_v17  ;;  %v958_v23 = vld [vmem:[#allocation8 + $0x38] sm:$0xff]  }
  0x40   :  { %868 = vmatpush3.bf16.msra.mxu0 %v937_v2 }
  0x41   :  { %869 = vmatprep.subr.bf16.mxu0 %v938_v3  ;;  %898 = vmatpush3.bf16.msra.mxu1 %v952_v17 }
  0x42   :  { %899 = vmatprep.subr.bf16.mxu1 %v953_v18 }
  0x44   :  { %870 = vmatpush3.bf16.msra.mxu0 %v938_v3 }
  0x45   :  { %871 = vmatprep.subr.bf16.mxu0 %v939_v5  ;;  %900 = vmatpush3.bf16.msra.mxu1 %v953_v18 }
  0x46   :  { %901 = vmatprep.subr.bf16.mxu1 %v954_v19 }
  0x48   :  { %872 = vmatpush3.bf16.msra.mxu0 %v939_v5 }
  0x49   :  { %873 = vmatprep.subr.bf16.mxu0 %v940_v6  ;;  %902 = vmatpush3.bf16.msra.mxu1 %v954_v19 }
  0x4a   :  { %903 = vmatprep.subr.bf16.mxu1 %v955_v20 }
  0x4c   :  { %874 = vmatpush3.bf16.msra.mxu0 %v940_v6 }
  0x4d   :  { %875 = vmatprep.subr.bf16.mxu0 %v941_v7  ;;  %904 = vmatpush3.bf16.msra.mxu1 %v955_v20 }
  0x4e   :  { %905 = vmatprep.subr.bf16.mxu1 %v956_v21 }
  0x50   :  { %876 = vmatpush3.bf16.msra.mxu0 %v941_v7 }
  0x51   :  { %877 = vmatprep.subr.bf16.mxu0 %v942_v8  ;;  %906 = vmatpush3.bf16.msra.mxu1 %v956_v21 }
  0x52   :  { %907 = vmatprep.subr.bf16.mxu1 %v957_v22 }
  0x54   :  { %878 = vmatpush3.bf16.msra.mxu0 %v942_v8 }
  0x55   :  { %908 = vmatpush3.bf16.msra.mxu1 %v957_v22 }
  0x56   :  { %909 = vmatprep.subr.bf16.mxu1 %v958_v23 }
  0x57   :  { %880 = vmatmul.mubr.bf16.vlgmr.msra.gmra.mrb[0].mxu0 %v944_v9 }
  0x58   :  { %883 = vmatprep.mubr.bf16.mxu0 %v945_v10 }
  0x59   :  { %910 = vmatpush3.bf16.msra.mxu1 %v958_v23 }
  0x5f   :  { %884 = vmatmul.mubr.bf16.gmra.mrb[4].mxu0 %v946_v11 }
  0x60   :  { %887 = vmatprep.mubr.bf16.mxu0 %v947_v12 }
  0x67   :  { %888 = vmatmul.mubr.bf16.gmra.mrb[8].mxu0 %v948_v13 }
  0x68   :  { %891 = vmatprep.mubr.bf16.mxu0 %v949_v14 }
  0x6f   :  { %892 = vmatmul.mubr.bf16.gmra.mrb[12].mxu0 %v950_v15 }
 0x12a   :  { %v1155_v24 = vpop.f32.mrb[0].mxu0 }
 0x12b   :  { %v1157_v25 = vpop.f32.mrb[1].mxu0  ;;  %v319_v31 = vmul.f32 %v1155_v24, %v1155_v24 }
 0x12c   :  { %v1159_v26 = vpop.f32.mrb[2].mxu0  ;;  %v317_v28 = vmul.f32 %v1157_v25, %v1157_v25 }
 0x12d   :  { %v1161_v27 = vpop.f32.mrb[3].mxu0  ;;  %v320_v34 = vmul.f32 %v1159_v26, %v1159_v26 }
 0x12e   :  { %v295_v29 = vadd.f32 %v1161_v27, %v1157_v25  ;;  %v318_v30 = vmul.f32 %v1161_v27, %v1161_v27 }
 0x130   :  { %v296_v32 = vadd.f32 %v1155_v24, %v295_v29  ;;  %v333_v33 = vadd.f32 %v318_v30, %v317_v28 }
 0x132   :  { %v334_v35 = vadd.f32 %v333_v33, %v319_v31  ;;  %v1174_v36 = vpop.f32.mrb[4].mxu0  ;;  %v297_v37 = vadd.f32 %v1159_v26, %v296_v32 }
 0x133   :  { %v1177_v38 = vpop.f32.mrb[5].mxu0  ;;  %v323_v47 = vmul.f32 %v1174_v36, %v1174_v36 }
 0x134   :  { %v298_v39 = vadd.f32 %v297_v37, %v1177_v38  ;;  %v321_v40 = vmul.f32 %v1177_v38, %v1177_v38  ;;  %v335_v41 = vadd.f32 %v334_v35, %v320_v34  ;;  %v1182_v42 = vpop.f32.mrb[6].mxu0 }
 0x135   :  { %v1184_v43 = vpop.f32.mrb[7].mxu0  ;;  %v324_v50 = vmul.f32 %v1182_v42, %v1182_v42 }
 0x136   :  { %v336_v44 = vadd.f32 %v335_v41, %v321_v40  ;;  %v299_v45 = vadd.f32 %v298_v39, %v1184_v43  ;;  %v322_v46 = vmul.f32 %v1184_v43, %v1184_v43 }
 0x138   :  { %v300_v48 = vadd.f32 %v1174_v36, %v299_v45  ;;  %v337_v49 = vadd.f32 %v336_v44, %v322_v46 }
 0x13a   :  { %v338_v51 = vadd.f32 %v337_v49, %v323_v47  ;;  %v1194_v52 = vpop.f32.mrb[8].mxu0  ;;  %v301_v53 = vadd.f32 %v1182_v42, %v300_v48 }
 0x13b   :  { %v1197_v54 = vpop.f32.mrb[9].mxu0  ;;  %v327_v63 = vmul.f32 %v1194_v52, %v1194_v52 }
 0x13c   :  { %v302_v55 = vadd.f32 %v301_v53, %v1197_v54  ;;  %v325_v56 = vmul.f32 %v1197_v54, %v1197_v54  ;;  %v339_v57 = vadd.f32 %v338_v51, %v324_v50  ;;  %v1202_v58 = vpop.f32.mrb[10].mxu0 }
 0x13d   :  { %v1204_v59 = vpop.f32.mrb[11].mxu0  ;;  %v328_v2 = vmul.f32 %v1202_v58, %v1202_v58 }
 0x13e   :  { %v340_v60 = vadd.f32 %v339_v57, %v325_v56  ;;  %v303_v61 = vadd.f32 %v302_v55, %v1204_v59  ;;  %v326_v62 = vmul.f32 %v1204_v59, %v1204_v59  ;;  %v1275_v57 = vstv %s1382_s4  ;;  %s1060_s4 = smov [#allocation9]  }
 0x140   :  { %v304_v0 = vadd.f32 %v1194_v52, %v303_v61  ;;  %v341_v1 = vadd.f32 %v340_v60, %v326_v62 }
 0x142   :  { %v342_v3 = vadd.f32 %v341_v1, %v327_v63  ;;  %v1214_v4 = vpop.f32.mrb[12].mxu0  ;;  %v305_v5 = vadd.f32 %v1202_v58, %v304_v0  ;;  %v1284_v63 = vld [vmem:[%s1381_s3] ss:$0 sm:$0xff] }
 0x143   :  { %v1217_v6 = vpop.f32.mrb[13].mxu0  ;;  %v331_v15 = vmul.f32 %v1214_v4, %v1214_v4 }
 0x144   :  { %v306_v7 = vadd.f32 %v305_v5, %v1217_v6  ;;  %v329_v8 = vmul.f32 %v1217_v6, %v1217_v6  ;;  %v343_v9 = vadd.f32 %v342_v3, %v328_v2  ;;  %v1222_v10 = vpop.f32.mrb[14].mxu0 }
 0x145   :  { %v283_v11 = vpop.f32.mrb[15].mxu0  ;;  %v332_v18 = vmul.f32 %v1222_v10, %v1222_v10 }
 0x146   :  { %v344_v12 = vadd.f32 %v343_v9, %v329_v8  ;;  %v307_v13 = vadd.f32 %v306_v7, %v283_v11  ;;  %v330_v14 = vmul.f32 %v283_v11, %v283_v11 }
 0x148   :  { %v308_v16 = vadd.f32 %v1214_v4, %v307_v13  ;;  %v345_v17 = vadd.f32 %v344_v12, %v330_v14 }
 0x14a   :  { %v309_v19 = vadd.f32 %v1222_v10, %v308_v16  ;;  %v346_v20 = vadd.f32 %v345_v17, %v331_v15 }
 0x14c   :  { %v310_v21 = vrot.slane %v309_v19, 4  ;;  %v347_v22 = vadd.f32 %v346_v20, %v332_v18 }
 0x14e   :  { %v311_v23 = vadd.f32 %v310_v21, %v309_v19  ;;  %v348_v28 = vrot.slane %v347_v22, 4 }
 0x150   :  { %v312_v29 = vrot.slane %v311_v23, 2  ;;  %v349_v30 = vadd.f32 %v348_v28, %v347_v22 }
 0x152   :  { %v313_v31 = vadd.f32 %v312_v29, %v311_v23  ;;  %v350_v32 = vrot.slane %v349_v30, 2 }
 0x154   :  { %v314_v33 = vrot.slane %v313_v31, 1  ;;  %v351_v34 = vadd.f32 %v350_v32, %v349_v30 }
 0x156   :  { %v315_v35 = vadd.f32 %v314_v33, %v313_v31  ;;  %v352_v37 = vrot.slane %v351_v34, 1 }
 0x158   :  { %v1230_v39 = vmul.f32 0.125, %v315_v35  ;;  %v353_v40 = vadd.f32 %v352_v37, %v351_v34 }
 0x15a   :  { %v354_v41 = vmul.f32 0.125, %v353_v40  ;;  %v355_v44 = vmul.f32 %v1230_v39, %v1230_v39  ;;  %v370_v45 = vsub.f32 %v283_v11, %v1230_v39  ;;  %v357_v46 = vsub.f32 %v1157_v25, %v1230_v39 }
 0x15b   :  { %v358_v47 = vsub.f32 %v1161_v27, %v1230_v39  ;;  %v359_v48 = vsub.f32 %v1155_v24, %v1230_v39  ;;  %v360_v49 = vsub.f32 %v1159_v26, %v1230_v39  ;;  %v361_v50 = vsub.f32 %v1177_v38, %v1230_v39 }
 0x15c   :  { %v356_v51 = vsub.f32 %v354_v41, %v355_v44  ;;  %v362_v53 = vsub.f32 %v1184_v43, %v1230_v39  ;;  %v363_v55 = vsub.f32 %v1174_v36, %v1230_v39  ;;  %v364_v25 = vsub.f32 %v1182_v42, %v1230_v39 }
 0x15d   :  { %v365_v27 = vsub.f32 %v1197_v54, %v1230_v39  ;;  %v366_v24 = vsub.f32 %v1204_v59, %v1230_v39  ;;  %v367_v26 = vsub.f32 %v1194_v52, %v1230_v39  ;;  %v368_v38 = vsub.f32 %v1202_v58, %v1230_v39  ;;  %v1270_v52 = vld [vmem:[%s1380_s2] ss:$0 sm:$0xff] }
 0x15e   :  { %v373_v56 = vadd.f32 1e-05, %v356_v51  ;;  %v369_v43 = vsub.f32 %v1217_v6, %v1230_v39  ;;  %v371_v36 = vsub.f32 %v1214_v4, %v1230_v39  ;;  %v372_v42 = vsub.f32 %v1222_v10, %v1230_v39 }
 0x160   :  { %959 = vrsqrt.f32 %v373_v56 }
 0x16a   :  { %v1265_v54 = vpop.eup %959 }
 0x16b   :  { %v388_v59 = vmul.f32 %v1265_v54, %v370_v45  ;;  %v375_v60 = vmul.f32 %v1265_v54, %v357_v46  ;;  %v376_v61 = vmul.f32 %v1265_v54, %v358_v47  ;;  %v377_v62 = vmul.f32 %v1265_v54, %v359_v48 }
 0x16c   :  { %v378_v0 = vmul.f32 %v1265_v54, %v360_v49  ;;  %v379_v1 = vmul.f32 %v1265_v54, %v361_v50  ;;  %v380_v2 = vmul.f32 %v1265_v54, %v362_v53  ;;  %v381_v3 = vmul.f32 %v1265_v54, %v363_v55 }
 0x16d   :  { %v411_v5 = vmul.f32 %v1270_v52, %v388_v59  ;;  %v398_v7 = vmul.f32 %v1270_v52, %v375_v60  ;;  %v399_v8 = vmul.f32 %v1270_v52, %v376_v61  ;;  %v400_v9 = vmul.f32 %v1270_v52, %v377_v62 }
 0x16e   :  { %v401_v11 = vmul.f32 %v1270_v52, %v378_v0  ;;  %v402_v12 = vmul.f32 %v1270_v52, %v379_v1  ;;  %v403_v13 = vmul.f32 %v1270_v52, %v380_v2  ;;  %v382_v14 = vmul.f32 %v1265_v54, %v364_v25 }
 0x16f   :  { %v1299_v15 = vadd.f32 %v1284_v63, %v411_v5  ;;  %v421_v16 = vadd.f32 %v1284_v63, %v398_v7  ;;  %v422_v17 = vadd.f32 %v1284_v63, %v399_v8  ;;  %v423_v18 = vadd.f32 %v1284_v63, %v400_v9 }
 0x170   :  { %v424_v19 = vadd.f32 %v1284_v63, %v401_v11  ;;  %v425_v20 = vadd.f32 %v1284_v63, %v402_v12  ;;  %v426_v21 = vadd.f32 %v1284_v63, %v403_v13  ;;  %v404_v22 = vmul.f32 %v1270_v52, %v381_v3 }
 0x171   :  { %vm438_vm0 = vcmp.gt.f32.partialorder %v421_v16, 0.0  ;;  %vm439_vm1 = vcmp.gt.f32.partialorder %v422_v17, 0.0  ;;  %v455_v23 = vmul.f32 %v1275_v57, %v421_v16  ;;  %v456_v28 = vmul.f32 %v1275_v57, %v422_v17 }
 0x172   :  { %vm440_vm2 = vcmp.gt.f32.partialorder %v423_v18, 0.0  ;;  %vm441_vm3 = vcmp.gt.f32.partialorder %v424_v19, 0.0  ;;  %v457_v29 = vmul.f32 %v1275_v57, %v423_v18  ;;  %v458_v30 = vmul.f32 %v1275_v57, %v424_v19 }
 0x173   :  { %v471_v31 = vsel %vm438_vm0, %v421_v16, %v455_v23  ;;  %v472_v32 = vsel %vm439_vm1, %v422_v17, %v456_v28  ;;  %vm442_vm4 = vcmp.gt.f32.partialorder %v425_v20, 0.0  ;;  %vm443_vm5 = vcmp.gt.f32.partialorder %v426_v21, 0.0 }
 0x174   :  { %v487_v33 = vpack.c.bf16 %v472_v32, %v471_v31  ;;  %v473_v34 = vsel %vm440_vm2, %v423_v18, %v457_v29  ;;  %v474_v35 = vsel %vm441_vm3, %v424_v19, %v458_v30  ;;  %v459_v37 = vmul.f32 %v1275_v57, %v425_v20 }
 0x175   :  { %v488_v40 = vpack.c.bf16 %v474_v35, %v473_v34  ;;  %v460_v41 = vmul.f32 %v1275_v57, %v426_v21  ;;  %v405_v44 = vmul.f32 %v1270_v52, %v382_v14  ;;  %v427_v45 = vadd.f32 %v1284_v63, %v404_v22 }
 0x176   :  { %911 = vmatprep.mubr.bf16.mxu1 %v487_v33  ;;  %v475_v46 = vsel %vm442_vm4, %v425_v20, %v459_v37  ;;  %v383_v47 = vmul.f32 %v1265_v54, %v365_v27  ;;  %v384_v48 = vmul.f32 %v1265_v54, %v366_v24  ;;  %v385_v49 = vmul.f32 %v1265_v54, %v367_v26 }
 0x177   :  { %912 = vmatmul.mubr.bf16.vlgmr.msra.gmra.mrb[0].mxu1 %v488_v40  ;;  %v476_v50 = vsel %vm443_vm5, %v426_v21, %v460_v41  ;;  %v428_v51 = vadd.f32 %v1284_v63, %v405_v44  ;;  %vm444_vm6 = vcmp.gt.f32.partialorder %v427_v45, 0.0  ;;  %v461_v53 = vmul.f32 %v1275_v57, %v427_v45 }
 0x178   :  { %v489_v55 = vpack.c.bf16 %v476_v50, %v475_v46  ;;  %v406_v25 = vmul.f32 %v1270_v52, %v383_v47  ;;  %v407_v56 = vmul.f32 %v1270_v52, %v384_v48  ;;  %v386_v27 = vmul.f32 %v1265_v54, %v368_v38 }
 0x179   :  { %vm445_vm7 = vcmp.gt.f32.partialorder %v428_v51, 0.0  ;;  %v462_v24 = vmul.f32 %v1275_v57, %v428_v51  ;;  %v477_v26 = vsel %vm444_vm6, %v427_v45, %v461_v53  ;;  %v408_v59 = vmul.f32 %v1270_v52, %v385_v49 }
 0x17a   :  { %915 = vmatprep.mubr.bf16.mxu1 %v489_v55  ;;  %v429_v60 = vadd.f32 %v1284_v63, %v406_v25  ;;  %v430_v61 = vadd.f32 %v1284_v63, %v407_v56  ;;  %v409_v62 = vmul.f32 %v1270_v52, %v386_v27  ;;  %v387_v58 = vmul.f32 %v1265_v54, %v369_v43 }
 0x17b   :  { %v478_v0 = vsel %vm445_vm7, %v428_v51, %v462_v24  ;;  %v431_v38 = vadd.f32 %v1284_v63, %v408_v59  ;;  %v468_v1 = vmul.f32 %v1275_v57, %v1299_v15  ;;  %vm451_vm11 = vcmp.gt.f32.partialorder %v1299_v15, 0.0 }
 0x17c   :  { %v490_v2 = vpack.c.bf16 %v478_v0, %v477_v26  ;;  %vm446_vm8 = vcmp.gt.f32.partialorder %v429_v60, 0.0  ;;  %vm447_vm9 = vcmp.gt.f32.partialorder %v430_v61, 0.0  ;;  %v463_v3 = vmul.f32 %v1275_v57, %v429_v60 }
 0x17d   :  { %v464_v5 = vmul.f32 %v1275_v57, %v430_v61  ;;  %v432_v7 = vadd.f32 %v1284_v63, %v409_v62  ;;  %vm448_vm10 = vcmp.gt.f32.partialorder %v431_v38, 0.0  ;;  %v465_v6 = vmul.f32 %v1275_v57, %v431_v38 }
 0x17e   :  { %v479_v8 = vsel %vm446_vm8, %v429_v60, %v463_v3  ;;  %v410_v43 = vmul.f32 %v1270_v52, %v387_v58  ;;  %v389_v9 = vmul.f32 %v1265_v54, %v371_v36  ;;  %v390_v17 = vmul.f32 %v1265_v54, %v372_v42 }
 0x17f   :  { %916 = vmatmul.mubr.bf16.gmra.mrb[4].mxu1 %v490_v2  ;;  %v480_v11 = vsel %vm447_vm9, %v430_v61, %v464_v5  ;;  %vm449_vm12 = vcmp.gt.f32.partialorder %v432_v7, 0.0  ;;  %v466_v12 = vmul.f32 %v1275_v57, %v432_v7  ;;  %v481_v13 = vsel %vm448_vm10, %v431_v38, %v465_v6 }
 0x180   :  { %v491_v14 = vpack.c.bf16 %v480_v11, %v479_v8  ;;  %v433_v16 = vadd.f32 %v1284_v63, %v410_v43  ;;  %v412_v18 = vmul.f32 %v1270_v52, %v389_v9  ;;  %v484_v4 = vsel %vm451_vm11, %v1299_v15, %v468_v1 }
 0x181   :  { %v482_v19 = vsel %vm449_vm12, %v432_v7, %v466_v12  ;;  %v413_v21 = vmul.f32 %v1270_v52, %v390_v17  ;;  %v830_v52 = vld [vmem:[%s1384_s6] ss:$0 sm:$0xff]  ;;  %s791_s6 = sshll.u32 %s1060_s4, 4  ;;  %s792_s6 = int_to_ptr.vmem [resolvable:$true] %s791_s6 }
 0x182   :  { %919 = vmatprep.mubr.bf16.mxu1 %v491_v14  ;;  %v492_v36 = vpack.c.bf16 %v482_v19, %v481_v13  ;;  %vm450_vm13 = vcmp.gt.f32.partialorder %v433_v16, 0.0  ;;  %v467_v20 = vmul.f32 %v1275_v57, %v433_v16  ;;  %v435_v22 = vadd.f32 %v1284_v63, %v412_v18  ;;  %s1027_s19 = scalar_lea.vmem %s792_s6, 2048  ;;  %p1032_p11 = scmp.lt.s32.totalorder %s792_s6, %s792_s6 }
 0x183   :  { %v436_v28 = vadd.f32 %v1284_v63, %v413_v21  ;;  %p1028_p10 = scmp.ne.s32.totalorder %s792_s6, %s1027_s19  ;;  %p1033_p12 = scmp.lt.s32.totalorder %s1027_s19, %s1027_s19 }
 0x184   :  { %v483_v23 = vsel %vm450_vm13, %v433_v16, %v467_v20  ;;  %vm452_vm14 = vcmp.gt.f32.partialorder %v435_v22, 0.0  ;;  %v469_v39 = vmul.f32 %v1275_v57, %v435_v22 }
 0x185   :  { %v493_v10 = vpack.c.bf16 %v484_v4, %v483_v23  ;;  %vm453_vm15 = vcmp.gt.f32.partialorder %v436_v28, 0.0  ;;  %v470_v42 = vmul.f32 %v1275_v57, %v436_v28  ;;  %p1034_p13 = por %p1033_p12, %p1032_p11 }
 0x186   :  { %v485_v54 = vsel %vm452_vm14, %v435_v22, %v469_v39 }
 0x187   :  { %920 = vmatmul.mubr.bf16.gmra.mrb[8].mxu1 %v492_v36  ;;  %v486_v15 = vsel %vm453_vm15, %v436_v28, %v470_v42  ;;  %p1035_p0 = pnand %p1034_p13, %p1028_p10 }
 0x188   :  { %923 = vmatprep.mubr.bf16.mxu1 %v493_v10  ;;  %v494_v29 = vpack.c.bf16 %v486_v15, %v485_v54 }
 0x18f   :  { %924 = vmatmul.mubr.bf16.gmra.mrb[12].mxu1 %v494_v29 }
 0x24a   :  { %v913_v30 = vpop.f32.mrb[0].mxu1 }
 0x24b   :  { %v756_v31 = vadd.f32 %v913_v30, %v830_v52  ;;  %v593_v63 = vpop.f32.mrb[1].mxu1 }
 0x24c   :  { %v754_v32 = vadd.f32 %v830_v52, %v593_v63  ;;  %v914_v33 = vpop.f32.mrb[2].mxu1 }
 0x24d   :  { %772 = vst [vmem:[#allocation9 + $0x10] sm:$0xff] %v756_v31  ;;  %v757_v34 = vadd.f32 %v914_v33, %v830_v52  ;;  %v596_v35 = vpop.f32.mrb[3].mxu1 }
 0x24e   :  { %770 = vst [vmem:[#allocation9] sm:$0xff] %v754_v32  ;;  %v755_v57 = vadd.f32 %v830_v52, %v596_v35 }
 0x24f   :  { %773 = vst [vmem:[#allocation9 + $0x18] sm:$0xff] %v757_v34 }
 0x250   :  { %771 = vst [vmem:[#allocation9 + $0x8] sm:$0xff] %v755_v57 }
 0x252   :  { %v917_v37 = vpop.f32.mrb[4].mxu1 }
 0x253   :  { %v760_v40 = vadd.f32 %v917_v37, %v830_v52  ;;  %v609_v41 = vpop.f32.mrb[5].mxu1 }
 0x254   :  { %v758_v44 = vadd.f32 %v830_v52, %v609_v41  ;;  %v918_v45 = vpop.f32.mrb[6].mxu1 }
 0x255   :  { %776 = vst [vmem:[#allocation9 + $0x30] sm:$0xff] %v760_v40  ;;  %v761_v46 = vadd.f32 %v918_v45, %v830_v52  ;;  %v612_v47 = vpop.f32.mrb[7].mxu1 }
 0x256   :  { %774 = vst [vmem:[#allocation9 + $0x20] sm:$0xff] %v758_v44  ;;  %v759_v48 = vadd.f32 %v830_v52, %v612_v47 }
 0x257   :  { %777 = vst [vmem:[#allocation9 + $0x38] sm:$0xff] %v761_v46 }
 0x258   :  { %775 = vst [vmem:[#allocation9 + $0x28] sm:$0xff] %v759_v48 }
 0x25a   :  { %v921_v49 = vpop.f32.mrb[8].mxu1 }
 0x25b   :  { %v764_v50 = vadd.f32 %v921_v49, %v830_v52  ;;  %v625_v51 = vpop.f32.mrb[9].mxu1 }
 0x25c   :  { %v762_v53 = vadd.f32 %v830_v52, %v625_v51  ;;  %v922_v55 = vpop.f32.mrb[10].mxu1 }
 0x25d   :  { %780 = vst [vmem:[#allocation9 + $0x50] sm:$0xff] %v764_v50  ;;  %v765_v25 = vadd.f32 %v922_v55, %v830_v52  ;;  %v628_v56 = vpop.f32.mrb[11].mxu1 }
 0x25e   :  { %778 = vst [vmem:[#allocation9 + $0x40] sm:$0xff] %v762_v53  ;;  %v763_v27 = vadd.f32 %v830_v52, %v628_v56 }
 0x25f   :  { %781 = vst [vmem:[#allocation9 + $0x58] sm:$0xff] %v765_v25 }
 0x260   :  { %779 = vst [vmem:[#allocation9 + $0x48] sm:$0xff] %v763_v27 }
 0x262   :  { %v925_v24 = vpop.f32.mrb[12].mxu1 }
 0x263   :  { %v768_v26 = vadd.f32 %v925_v24, %v830_v52  ;;  %v641_v59 = vpop.f32.mrb[13].mxu1 }
 0x264   :  { %v766_v60 = vadd.f32 %v830_v52, %v641_v59  ;;  %v926_v61 = vpop.f32.mrb[14].mxu1 }
 0x265   :  { %784 = vst [vmem:[#allocation9 + $0x70] sm:$0xff] %v768_v26  ;;  %v769_v62 = vadd.f32 %v926_v61, %v830_v52  ;;  %v644_v58 = vpop.f32.mrb[15].mxu1 }
 0x266   :  { %782 = vst [vmem:[#allocation9 + $0x60] sm:$0xff] %v766_v60  ;;  %v767_v0 = vadd.f32 %v830_v52, %v644_v58 }
 0x267   :  { %785 = vst [vmem:[#allocation9 + $0x78] sm:$0xff] %v769_v62 }
 0x268   :  { %783 = vst [vmem:[#allocation9 + $0x68] sm:$0xff] %v767_v0 }
 0x269   :  { %1038 = shalt.err (!%p1035_p0)
}
 0x26a   :  { %s1039_s22 = scalar_lea.hbm %s1385_s7, 2048 }
 0x26b   :  { %p1040_p1 = scmp.ne.s32.totalorder %s1385_s7, %s1039_s22  ;;  %p1043_p2 = scmp.lt.u32.totalorder %s1039_s22, %s1385_s7 }
 0x26d   :  { %p1045_p3 = pnand %p1043_p2, %p1040_p1 }
 0x26f   :  { %1048 = shalt.err (!%p1045_p3)
}
 0x270   :  { %s1061_s26 = smov 128   ;;  %s1062_s28 = smov 8  }
 0x271   :  { %797 = dma.vmem_to_hbm [thread:$0]  %s792_s6, 2048, %s1385_s7, [#allocation5], %s1061_s26, %s1061_s26, %s1062_s28  }
 0x272   :  { %1053 = dma.done.wait [#allocation5], 2048  }
 0x273   :  { %1054 = vsyncadd [#allocation5], 4294965248 }
 0x274   :  { %801 = vsyncpa [#allocation4], 1 }
 0x275   :  { %802 = vsyncpa [#allocation7], 1 }
 0x276   :  { %803 = vsyncpa [#allocation5], 1 }

</bundles_post_ra>
